<compile_context>
chip_gen: v7x
topology: tpu7x:2x2x1
jax: 0.10.0
libtpu: 0.0.40
codegen_flags: <defaults>
</compile_context>

<pallas_src>
import functools
import math

import jax
import jax.numpy as jnp
from jax import lax
from jax.experimental import pallas as pl
from jax.experimental.pallas import tpu as pltpu


def _round_up(n, m):
    return ((n + m - 1) // m) * m


def _gelu_exact(g):
    # Matches torch.nn.functional.gelu default (erf-based, exact).
    return 0.5 * g * (1.0 + lax.erf(g * (1.0 / math.sqrt(2.0))))


def _gelu_tanh(g):
    # Opt-in tanh approximation (routes to EUP; numerics differ slightly from torch).
    c = math.sqrt(2.0 / math.pi)
    return 0.5 * g * (1.0 + jnp.tanh(c * (g + 0.044715 * g * g * g)))


# ----------------------------------------------------------------------------- kernel


def _make_kernel(use_tanh_gelu):
    gelu = _gelu_tanh if use_tanh_gelu else _gelu_exact

    def residual_ff_kernel(x_ref, w1a_ref, b1a_ref, w1g_ref, b1g_ref,
                           w2_ref, b2_ref, o_ref, acc_ref):
        k = pl.program_id(1)  # hidden (reduction) axis, innermost

        @pl.when(k == 0)
        def _():
            acc_ref[...] = jnp.zeros_like(acc_ref)

        x = x_ref[...]
        # MXU operands in the weights' dtype (bf16 by default), f32 accumulation.
        x_mm = x.astype(w1a_ref.dtype)

        # GEGLU: two independent narrow dots for this hidden tile (no (tm, 2H)
        # intermediate, no unaligned slicing).
        a = jnp.dot(x_mm, w1a_ref[...], preferred_element_type=jnp.float32)
        a = a + b1a_ref[...].astype(jnp.float32)
        g = jnp.dot(x_mm, w1g_ref[...], preferred_element_type=jnp.float32)
        g = g + b1g_ref[...].astype(jnp.float32)
        act = a * gelu(g)

        # Dropout(p=0) is the identity. Partial second linear, accumulated in f32.
        acc_ref[...] += jnp.dot(act.astype(w2_ref.dtype), w2_ref[...],
                                preferred_element_type=jnp.float32)

        @pl.when(k == pl.num_programs(1) - 1)
        def _():
            out = acc_ref[...] + b2_ref[...].astype(jnp.float32) + x.astype(jnp.float32)
            o_ref[...] = out.astype(o_ref.dtype)

    return residual_ff_kernel


# ----------------------------------------------------------------- capability queries


def _vmem_capacity_bytes():
    try:
        return int(pltpu.get_tpu_info().vmem_capacity_bytes)
    except Exception:
        return 64 * 2**20  # assume the smallest generation (v7x) if the query fails


def _probe_copy_kernel(x_ref, o_ref):
    o_ref[...] = x_ref[...]


@functools.cache
def _buffered_one_ok():
    """One-time feature probe: does this jax/Mosaic accept pipeline_mode=pl.Buffered(1)?

    Only the tiny probe is guarded; the real kernel's compile errors are never masked.
    """
    try:
        spec = pl.BlockSpec((8, 128), lambda i: (0, 0), pipeline_mode=pl.Buffered(1))
        fn = pl.pallas_call(
            _probe_copy_kernel,
            out_shape=jax.ShapeDtypeStruct((8, 128), jnp.float32),
            grid=(2,),
            in_specs=[spec],
            out_specs=pl.BlockSpec((8, 128), lambda i: (0, 0)))
        jax.jit(fn).lower(jax.ShapeDtypeStruct((8, 128), jnp.float32)).compile()
        return True
    except Exception:
        return False


# --------------------------------------------------------------------- tile selection


def _hidden_step_bytes(dim, hidden, tm, th, w_isz):
    streamed = th < hidden
    nbuf = 2 if streamed else 1            # constant blocks single-buffered (Buffered(1))
    w = 3 * dim * th * w_isz * nbuf        # W1a + W1g + W2 tiles
    interm = 3 * tm * th * 4               # a, g, act in f32
    return w + interm


def _pick_hidden_tile(dim, hidden, tm, w_isz, budget):
    """Largest lane-aligned hidden tile (dividing hidden) whose per-step VMEM fits."""
    if hidden % 128 != 0:
        return hidden                      # no clean lane-aligned split; keep resident
    if _hidden_step_bytes(dim, hidden, tm, hidden, w_isz) <= budget:
        return hidden                      # everything fits -> single reduction step
    cands = [k * 128 for k in range(hidden // 128, 0, -1) if hidden % (k * 128) == 0]
    for th in cands:
        if _hidden_step_bytes(dim, hidden, tm, th, w_isz) <= budget:
            return th
    return cands[-1]                       # 128: smallest aligned tile


# --------------------------------------------------------------------------- builder


def _build_ff_call(rows, dim, hidden, tm, th, out_dtype, vmem_limit, cost,
                   single_buffer_consts, use_tanh_gelu):
    n_i = pl.cdiv(rows, tm)
    n_k = pl.cdiv(hidden, th)
    # Blocks whose index map is constant over the whole grid only need 1 buffer.
    const_kw = {"pipeline_mode": pl.Buffered(1)} if single_buffer_consts else {}
    wkw = const_kw if n_k == 1 else {}     # weights vary along k when streamed

    return pl.pallas_call(
        _make_kernel(use_tanh_gelu),
        out_shape=jax.ShapeDtypeStruct((rows, dim), out_dtype),
        grid_spec=pltpu.PrefetchScalarGridSpec(
            num_scalar_prefetch=0,
            grid=(n_i, n_k),
            in_specs=[
                pl.BlockSpec((tm, dim), lambda i, k: (i, 0)),             # x rows (resident over k)
                pl.BlockSpec((dim, th), lambda i, k: (0, k), **wkw),      # W1 'value' half tile
                pl.BlockSpec((1, th), lambda i, k: (0, k), **wkw),        # b1 'value' tile
                pl.BlockSpec((dim, th), lambda i, k: (0, k), **wkw),      # W1 gate half tile
                pl.BlockSpec((1, th), lambda i, k: (0, k), **wkw),        # b1 gate tile
                pl.BlockSpec((th, dim), lambda i, k: (k, 0), **wkw),      # W2 tile
                pl.BlockSpec((1, dim), lambda i, k: (0, 0), **const_kw),  # b2 (always constant)
            ],
            out_specs=pl.BlockSpec((tm, dim), lambda i, k: (i, 0)),
            scratch_shapes=[pltpu.VMEM((tm, dim), jnp.float32)],          # f32 accumulator
        ),
        compiler_params=pltpu.CompilerParams(
            dimension_semantics=("parallel", "arbitrary"),
            vmem_limit_bytes=vmem_limit),
        cost_estimate=cost,
    )


# ---------------------------------------------------------------------------- wrapper


def residual_feed_forward(x, w1, b1, w2, b2, *, mm_dtype=jnp.bfloat16,
                          tm=None, hidden_tile=None, use_tanh_gelu=False):
    """out = x + Linear2(GEGLU(Linear1(x))), x: (B, S, dim).

    Weights are (in_features, out_features) so the kernel computes row @ W + b
    (equivalent to PyTorch's x @ W.T). mm_dtype is the MXU operand dtype
    (bf16 default: ~3x matmul throughput, half the weight VMEM; accumulation is
    always f32; biases and the residual stay f32). Pass mm_dtype=jnp.float32
    for torch-exact numerics.
    """
    B, S, dim = x.shape
    two_hidden = w1.shape[1]
    hidden = two_hidden // 2
    rows = B * S

    x2 = x.reshape(rows, dim)
    # Split W1/b1 into the two GEGLU branches once, outside the kernel.
    w1a = w1[:, :hidden].astype(mm_dtype)
    w1g = w1[:, hidden:].astype(mm_dtype)
    w2c = w2.astype(mm_dtype)
    b1a = b1[:hidden].reshape(1, hidden).astype(jnp.float32)
    b1g = b1[hidden:].reshape(1, hidden).astype(jnp.float32)
    b2_2d = b2.reshape(1, dim).astype(jnp.float32)

    x_isz = jnp.dtype(x.dtype).itemsize
    w_isz = jnp.dtype(mm_dtype).itemsize

    cap = _vmem_capacity_bytes()           # 64 MiB on v7x, 128 MiB on v5e/v6e
    usable = cap - 8 * 2**20               # stay under the physical cap with headroom

    # ---- row tile ----------------------------------------------------------
    row_align = 16 if x_isz < 4 else 8     # bf16 I/O packs 2 rows / sublane
    if tm is None:
        tm = 512 if (cap >= 96 * 2**20 and rows >= 1024) else 256  # bigger tiles on v5e/v6e
    tm = max(row_align, _round_up(min(tm, _round_up(rows, row_align)), row_align))
    n_i = pl.cdiv(rows, tm)
    if n_i == 1 and rows > row_align:
        tm = _round_up(pl.cdiv(rows, 2), row_align)         # >= 2 steps: keep both v7x TCs busy
    elif 2 < n_i < 16 and n_i % 2 == 1:
        tm = _round_up(pl.cdiv(rows, n_i + 1), row_align)   # even, balanced split across 2 TCs
    n_i = pl.cdiv(rows, tm)

    # ---- hidden tile (streams W1/W2, bounds f32 intermediates) --------------
    io_bytes = (2 * tm * dim * x_isz       # x tile, double-buffered
                + 2 * tm * dim * x_isz     # out tile, double-buffered
                + tm * dim * 4)            # f32 accumulator scratch
    if hidden_tile is None:
        th = _pick_hidden_tile(dim, hidden, tm, w_isz,
                               max(usable - io_bytes, 4 * 2**20))
    else:
        th = hidden_tile

    bias_bytes = 2 * (2 * th + dim) * 4
    need = io_bytes + _hidden_step_bytes(dim, hidden, tm, th, w_isz) + bias_bytes
    vmem_limit = int(min(usable, max(32 * 2**20, int(1.5 * need))))

    cost = pl.CostEstimate(
        flops=6 * rows * dim * hidden,                 # two (dim->hidden) dots + one (hidden->dim)
        transcendentals=rows * hidden,
        bytes_accessed=int(x2.nbytes) + 3 * dim * hidden * w_isz + rows * dim * x_isz)

    out2 = _build_ff_call(rows, dim, hidden, tm, th, x.dtype, vmem_limit, cost,
                          single_buffer_consts=_buffered_one_ok(),
                          use_tanh_gelu=use_tanh_gelu)(
        x2, w1a, b1a, w1g, b1g, w2c, b2_2d)
    return out2.reshape(B, S, dim)


# ----------------------------------------------------------------------- init / ref


def init_params(key, dim, mult):
    """Deterministic init mimicking nn.Linear's uniform(-1/sqrt(fan_in), 1/sqrt(fan_in))."""
    hidden = dim * mult
    k1, k2, k3, k4 = jax.random.split(key, 4)
    bound1 = 1.0 / math.sqrt(dim)
    w1 = jax.random.uniform(k1, (dim, 2 * hidden), jnp.float32, -bound1, bound1)
    b1 = jax.random.uniform(k2, (2 * hidden,), jnp.float32, -bound1, bound1)
    bound2 = 1.0 / math.sqrt(hidden)
    w2 = jax.random.uniform(k3, (hidden, dim), jnp.float32, -bound2, bound2)
    b2 = jax.random.uniform(k4, (dim,), jnp.float32, -bound2, bound2)
    return w1, b1, w2, b2


def residual_feed_forward_ref(x, w1, b1, w2, b2, mm_dtype=jnp.float32):
    """Pure-JAX reference. mm_dtype mirrors the kernel's MXU operand dtype."""
    B, S, dim = x.shape
    hidden = w1.shape[1] // 2
    x2 = x.reshape(-1, dim)
    h = jnp.dot(x2.astype(mm_dtype), w1.astype(mm_dtype),
                preferred_element_type=jnp.float32) + b1.astype(jnp.float32)
    a, g = h[:, :hidden], h[:, hidden:]
    act = a * _gelu_exact(g)
    out = jnp.dot(act.astype(mm_dtype), w2.astype(mm_dtype),
                  preferred_element_type=jnp.float32)
    out = out + b2.astype(jnp.float32) + x2.astype(jnp.float32)
    return out.reshape(B, S, dim).astype(x.dtype)


if __name__ == "__main__":
    key = jax.random.PRNGKey(0)
    kx, kp = jax.random.split(key)

    # Small but lane-aligned shapes: dim=128, hidden=256 (multiples of 128).
    B, S, dim, mult = 2, 8, 128, 2
    x = jax.random.normal(kx, (B, S, dim), dtype=jnp.float32)
    w1, b1, w2, b2 = init_params(kp, dim, mult)

    ref_f32 = residual_feed_forward_ref(x, w1, b1, w2, b2, mm_dtype=jnp.float32)

    # f32 MXU path: matches the exact (torch-equivalent) reference tightly.
    out_f32 = jax.block_until_ready(
        residual_feed_forward(x, w1, b1, w2, b2, mm_dtype=jnp.float32))
    assert out_f32.shape == (B, S, dim)
    assert jnp.allclose(out_f32, ref_f32, atol=1e-4, rtol=1e-4), "f32 path mismatch"

    # Default bf16-operand fast path: tight vs. a bf16-operand reference, loose
    # vs. the exact f32 reference (difference = bf16 rounding of matmul inputs).
    out_bf16 = jax.block_until_ready(residual_feed_forward(x, w1, b1, w2, b2))
    ref_bf16 = residual_feed_forward_ref(x, w1, b1, w2, b2, mm_dtype=jnp.bfloat16)
    assert out_bf16.shape == (B, S, dim) and out_bf16.dtype == x.dtype
    assert jnp.allclose(out_bf16, ref_bf16, atol=2e-3, rtol=2e-3), "bf16 path mismatch (bf16 ref)"
    assert jnp.allclose(out_bf16, ref_f32, atol=5e-2, rtol=5e-2), "bf16 path mismatch (f32 ref)"

    print("KERNEL_OK")
</pallas_src>

<mosaic_0001>
module attributes {stable_mosaic.version = 11 : i64} {
  func.func @residual_ff_kernel(%arg0: i32, %arg1: i32, %arg2: memref<8x128xf32, #tpu.memory_space<vmem>>, %arg3: memref<128x256xf32, #tpu.memory_space<vmem>>, %arg4: memref<1x256xf32, #tpu.memory_space<vmem>>, %arg5: memref<128x256xf32, #tpu.memory_space<vmem>>, %arg6: memref<1x256xf32, #tpu.memory_space<vmem>>, %arg7: memref<256x128xf32, #tpu.memory_space<vmem>>, %arg8: memref<1x128xf32, #tpu.memory_space<vmem>>, %arg9: memref<8x128xf32, #tpu.memory_space<vmem>>, %arg10: memref<8x128xf32, #tpu.memory_space<vmem>>) attributes {dimension_semantics = [#tpu.dimension_semantics<parallel>, #tpu.dimension_semantics<arbitrary>], iteration_bounds = array<i64: 2, 1>, scalar_prefetch = 0 : i64, scratch_operands = 1 : i64, tpu.core_type = #tpu.core_type<tc>, window_params = [{transform_indices = @transform_0, window_bounds = array<i64: 8, 128>}, {transform_indices = @transform_1, window_bounds = array<i64: 128, 256>}, {transform_indices = @transform_2, window_bounds = array<i64: 1, 256>}, {transform_indices = @transform_3, window_bounds = array<i64: 128, 256>}, {transform_indices = @transform_4, window_bounds = array<i64: 1, 256>}, {transform_indices = @transform_5, window_bounds = array<i64: 256, 128>}, {pipeline_mode = #tpu.pipeline_mode<synchronous>, transform_indices = @transform_6, window_bounds = array<i64: 1, 128>}, {transform_indices = @transform_7, window_bounds = array<i64: 8, 128>}]} {
    %c0_i32 = arith.constant 0 : i32
    %0 = arith.cmpi eq, %arg1, %c0_i32 : i32
    %1 = arith.extui %0 : i1 to i32
    %c0_i32_0 = arith.constant 0 : i32
    %2 = arith.cmpi ne, %1, %c0_i32_0 : i32
    scf.if %2 {
      %cst_23 = arith.constant 0.000000e+00 : f32
      %31 = vector.broadcast %cst_23 : f32 to vector<8x128xf32>
      %c0_24 = arith.constant 0 : index
      %c0_25 = arith.constant 0 : index
      %32 = vector.load %arg10[%c0_24, %c0_25] : memref<8x128xf32, #tpu.memory_space<vmem>>, vector<8x128xf32>
      tpu.vector_store %arg10[%c0_24, %c0_25], %31 {strides = array<i32>} : memref<8x128xf32, #tpu.memory_space<vmem>>, vector<8x128xf32>,
    } else {
    }
    %c0 = arith.constant 0 : index
    %c0_1 = arith.constant 0 : index
    %3 = vector.load %arg2[%c0, %c0_1] : memref<8x128xf32, #tpu.memory_space<vmem>>, vector<8x128xf32>
    %c0_2 = arith.constant 0 : index
    %c0_3 = arith.constant 0 : index
    %4 = vector.load %arg3[%c0_2, %c0_3] : memref<128x256xf32, #tpu.memory_space<vmem>>, vector<128x256xf32>
    %cst = arith.constant dense<0.000000e+00> : vector<8x256xf32>
    %5 = tpu.matmul %3, %4, %cst {dimension_numbers = #tpu.dot_dimension_numbers<[1], [0], [0], [1], [0, 0, 1, 1], [], []>} : vector<8x128xf32>, vector<128x256xf32>, vector<8x256xf32> -> vector<8x256xf32>
    %c0_4 = arith.constant 0 : index
    %c0_5 = arith.constant 0 : index
    %6 = vector.load %arg4[%c0_4, %c0_5] : memref<1x256xf32, #tpu.memory_space<vmem>>, vector<1x256xf32>
    %7 = vector.broadcast %6 : vector<1x256xf32> to vector<8x256xf32>
    %8 = arith.addf %5, %7 : vector<8x256xf32>
    %c0_6 = arith.constant 0 : index
    %c0_7 = arith.constant 0 : index
    %9 = vector.load %arg5[%c0_6, %c0_7] : memref<128x256xf32, #tpu.memory_space<vmem>>, vector<128x256xf32>
    %cst_8 = arith.constant dense<0.000000e+00> : vector<8x256xf32>
    %10 = tpu.matmul %3, %9, %cst_8 {dimension_numbers = #tpu.dot_dimension_numbers<[1], [0], [0], [1], [0, 0, 1, 1], [], []>} : vector<8x128xf32>, vector<128x256xf32>, vector<8x256xf32> -> vector<8x256xf32>
    %c0_9 = arith.constant 0 : index
    %c0_10 = arith.constant 0 : index
    %11 = vector.load %arg6[%c0_9, %c0_10] : memref<1x256xf32, #tpu.memory_space<vmem>>, vector<1x256xf32>
    %12 = vector.broadcast %11 : vector<1x256xf32> to vector<8x256xf32>
    %13 = arith.addf %10, %12 : vector<8x256xf32>
    %cst_11 = arith.constant 5.000000e-01 : f32
    %14 = vector.broadcast %cst_11 : f32 to vector<8x256xf32>
    %15 = arith.mulf %14, %13 : vector<8x256xf32>
    %cst_12 = arith.constant 0.707106769 : f32
    %16 = vector.broadcast %cst_12 : f32 to vector<8x256xf32>
    %17 = arith.mulf %13, %16 : vector<8x256xf32>
    %18 = math.erf %17 : vector<8x256xf32>
    %cst_13 = arith.constant 1.000000e+00 : f32
    %19 = vector.broadcast %cst_13 : f32 to vector<8x256xf32>
    %20 = arith.addf %19, %18 : vector<8x256xf32>
    %21 = arith.mulf %15, %20 : vector<8x256xf32>
    %22 = arith.mulf %8, %21 : vector<8x256xf32>
    %c0_14 = arith.constant 0 : index
    %c0_15 = arith.constant 0 : index
    %23 = vector.load %arg10[%c0_14, %c0_15] : memref<8x128xf32, #tpu.memory_space<vmem>>, vector<8x128xf32>
    %c0_16 = arith.constant 0 : index
    %c0_17 = arith.constant 0 : index
    %24 = vector.load %arg7[%c0_16, %c0_17] : memref<256x128xf32, #tpu.memory_space<vmem>>, vector<256x128xf32>
    %cst_18 = arith.constant dense<0.000000e+00> : vector<8x128xf32>
    %25 = tpu.matmul %22, %24, %cst_18 {dimension_numbers = #tpu.dot_dimension_numbers<[1], [0], [0], [1], [0, 0, 1, 1], [], []>} : vector<8x256xf32>, vector<256x128xf32>, vector<8x128xf32> -> vector<8x128xf32>
    %26 = arith.addf %23, %25 : vector<8x128xf32>
    %c0_19 = arith.constant 0 : index
    %c0_20 = arith.constant 0 : index
    %27 = vector.load %arg10[%c0_19, %c0_20] : memref<8x128xf32, #tpu.memory_space<vmem>>, vector<8x128xf32>
    tpu.vector_store %arg10[%c0_19, %c0_20], %26 {strides = array<i32>} : memref<8x128xf32, #tpu.memory_space<vmem>>, vector<8x128xf32>,
    %c0_i32_21 = arith.constant 0 : i32
    %28 = arith.cmpi eq, %arg1, %c0_i32_21 : i32
    %29 = arith.extui %28 : i1 to i32
    %c0_i32_22 = arith.constant 0 : i32
    %30 = arith.cmpi ne, %29, %c0_i32_22 : i32
    scf.if %30 {
      %c0_23 = arith.constant 0 : index
      %c0_24 = arith.constant 0 : index
      %31 = vector.load %arg10[%c0_23, %c0_24] : memref<8x128xf32, #tpu.memory_space<vmem>>, vector<8x128xf32>
      %c0_25 = arith.constant 0 : index
      %c0_26 = arith.constant 0 : index
      %32 = vector.load %arg8[%c0_25, %c0_26] : memref<1x128xf32, #tpu.memory_space<vmem>>, vector<1x128xf32>
      %33 = vector.broadcast %32 : vector<1x128xf32> to vector<8x128xf32>
      %34 = arith.addf %31, %33 : vector<8x128xf32>
      %35 = arith.addf %34, %3 : vector<8x128xf32>
      %c0_27 = arith.constant 0 : index
      %c0_28 = arith.constant 0 : index
      %36 = vector.load %arg9[%c0_27, %c0_28] : memref<8x128xf32, #tpu.memory_space<vmem>>, vector<8x128xf32>
      tpu.vector_store %arg9[%c0_27, %c0_28], %35 {strides = array<i32>} : memref<8x128xf32, #tpu.memory_space<vmem>>, vector<8x128xf32>,
    } else {
    }
    return
  }
  func.func @transform_0(%arg0: i32, %arg1: i32) -> (i32, i32) {
    %c0_i32 = arith.constant 0 : i32
    %c0_i32_0 = arith.constant 0 : i32
    return %arg0, %c0_i32 : i32, i32
  }
  func.func @transform_1(%arg0: i32, %arg1: i32) -> (i32, i32) {
    %c0_i32 = arith.constant 0 : i32
    %c0_i32_0 = arith.constant 0 : i32
    return %c0_i32, %arg1 : i32, i32
  }
  func.func @transform_2(%arg0: i32, %arg1: i32) -> (i32, i32) {
    %c0_i32 = arith.constant 0 : i32
    %c0_i32_0 = arith.constant 0 : i32
    return %c0_i32, %arg1 : i32, i32
  }
  func.func @transform_3(%arg0: i32, %arg1: i32) -> (i32, i32) {
    %c0_i32 = arith.constant 0 : i32
    %c0_i32_0 = arith.constant 0 : i32
    return %c0_i32, %arg1 : i32, i32
  }
  func.func @transform_4(%arg0: i32, %arg1: i32) -> (i32, i32) {
    %c0_i32 = arith.constant 0 : i32
    %c0_i32_0 = arith.constant 0 : i32
    return %c0_i32, %arg1 : i32, i32
  }
  func.func @transform_5(%arg0: i32, %arg1: i32) -> (i32, i32) {
    %c0_i32 = arith.constant 0 : i32
    %c0_i32_0 = arith.constant 0 : i32
    return %arg1, %c0_i32 : i32, i32
  }
  func.func @transform_6(%arg0: i32, %arg1: i32) -> (i32, i32) {
    %c0_i32 = arith.constant 0 : i32
    %c0_i32_0 = arith.constant 0 : i32
    %c0_i32_1 = arith.constant 0 : i32
    return %c0_i32, %c0_i32_0 : i32, i32
  }
  func.func @transform_7(%arg0: i32, %arg1: i32) -> (i32, i32) {
    %c0_i32 = arith.constant 0 : i32
    %c0_i32_0 = arith.constant 0 : i32
    return %arg0, %c0_i32 : i32, i32
  }
}

</mosaic_0001>

<bundles_post_ra>
// kernel: tpu_custom_call.1
= control target key start
LH: loop header
LB: loop body
LE: loop exit
PB: predicated region body
PF: predicated region fallthrough
CT: control target
= control target key end

     0   :  { %s1740_s0 = inlined_call_operand.hbm [shape: f32[16,128], index: 0, kind: input, shape index: {}]   ;;  %s1741_s1 = inlined_call_operand.hbm [shape: f32[128,256], index: 1, kind: input, shape index: {}]   ;;  %s1742_s2 = inlined_call_operand.vmem [shape: f32[1,256], index: 2, kind: input, shape index: {}]   ;;  %s1743_s3 = inlined_call_operand.hbm [shape: f32[128,256], index: 3, kind: input, shape index: {}]   ;;  %s1744_s4 = inlined_call_operand.vmem [shape: f32[1,256], index: 4, kind: input, shape index: {}]   ;;  %s1745_s5 = inlined_call_operand.hbm [shape: f32[256,128], index: 5, kind: input, shape index: {}]   ;;  %s1746_s6 = inlined_call_operand.vmem [shape: f32[1,128], index: 6, kind: input, shape index: {}]   ;;  %s1747_s7 = inlined_call_operand.hbm [shape: f32[16,128], index: 7, kind: output, shape index: {}]  }
   0x1   :  { %1755 = sst [smem:[#allocation18_spill]] %s1746_s6 }
   0x2   :  { %1756 = sst [smem:[#allocation19_spill]] %s1747_s7 }
   0x3   :  { %12 = vsyncpa [#allocation4], 0 }
   0x4   :  { %14 = vsyncpa [#allocation4 + $0x1], 0 }
   0x5   :  { %15 = vsyncpa [#allocation7], 0 }
   0x6   :  { %16 = vsyncpa [#allocation10], 0 }
   0x7   :  { %17 = vsyncpa [#allocation5], 0 }
   0x8   :  { %19 = vsyncpa [#allocation5 + $0x1], 0  ;;  %s1444_s24 = smov 0   ;;  %s1446_s25 = smov 0  }
   0x9   :  { %s1448_s26 = smov 0   ;;  %s1450_s27 = smov 0  }
   0xa   :  { %s1452_s28 = smov 0   ;;  %s1454_s29 = smov 0  }
   0xb LB: > { %1757 = sst [smem:[#allocation16_spill]] %s1372_s24  ;;  %s933_s30 = sadd.s32 4294967295, %s1392_s29   ;;  %s1392_s29 = sphi %s1454_s29, %s25_s29   ;;  %s1388_s28 = sphi %s1452_s28, %s1782_s28   ;;  %s1384_s27 = sphi %s1450_s27, %s1781_s27   ;;  %s1380_s26 = sphi %s1448_s26, %s1780_s26   ;;  %s1376_s25 = sphi %s1446_s25, %s1779_s25   ;;  %s1372_s24 = sphi %s1444_s24, %s1778_s24  }
   0xc   : > { %s934_s8 = sadd.s32 4294967294, %s1392_s29   ;;  %p57_p0 = scmp.ne.s32.totalorder %s1376_s25, %s1372_s24 }
   0xd   : > { %p1478_p1 = scmp.eq.s32.totalorder %s933_s30, 0  ;;  %p1482_p2 = scmp.eq.s32.totalorder %s933_s30, 1 }
   0xe   : > { %p238_p3 = scmp.eq.s32.totalorder %s934_s8, 1  ;;  %p935_p5 = scmp.ge.s32.totalorder %s1392_s29, 1 }
   0xf   : > { %s1758_s9 = scalar_select %p1478_p1, 1, 0 }
  0x10   : > { %s1759_s10 = scalar_select %p1482_p2, 1, 0 }
  0x11   : > { %p1488_p4 = por %p1478_p1, %p57_p0  ;;  %p1493_p6 = por %p238_p3, %p57_p0 }
  0x12   : > { %p245_p7 = scmp.lt.s32.totalorder %s1392_s29, 3  ;;  %s1394_s14 = smov [#allocation6]  }
  0x13   : > { %s1760_s11 = scalar_select %p1488_p4, 1, 0 }
  0x14   : > { %s1761_s12 = scalar_select %p1493_p6, 1, 0 }
  0x15   : > { %p1498_p8 = pnand %p935_p5, %p245_p7  ;;  %s260_s15 = sshll.u32 %s1394_s14, 4  ;;  %s1502_s15 = int_to_ptr.vmem [resolvable:$true] %s260_s15 }
  0x16   : > { %1762 = sst [smem:[#allocation17_spill]] %s1761_s12  ;;  %s1395_s17 = smov [#allocation8]  }
  0x17   : > { %s1763_s13 = scalar_select %p1498_p8, 1, 0 }
  0x18   : > { %p1102_p9 = pneg %p1498_p8  ;;  %s284_s18 = sshll.u32 %s1395_s17, 4  ;;  %s1513_s18 = int_to_ptr.vmem [resolvable:$true] %s284_s18 }
  0x19   : > { %s1396_s19 = smov [#allocation9]   ;;  %s1188_s23 = scalar_lea.hbm %s1741_s1, 4096 }
  0x1a   : > { %p1509_p11 = pnand %p1102_p9, %p1478_p1  ;;  %s1515_s20 = sshll.u32 %s1396_s19, 4  ;;  %s309_s20 = int_to_ptr.vmem [resolvable:$true] %s1515_s20 }
  0x1b   : > { %p1189_p12 = scmp.ne.s32.totalorder %s1741_s1, %s1188_s23  ;;  %p1195_p5 = scmp.lt.u32.totalorder %s1188_s23, %s1741_s1 }
  0x1c   : > { %p1525_p13 = pneg %p1509_p11 }
  0x1e   : > { %p1191_p0 = pnand %p1525_p13, %p1189_p12 }
  0x20   : > { %p1192_p3 = pneg %p1191_p0 }
  0x22   : > { %p1197_p7 = pnand %p1195_p5, %p1192_p3 }
  0x24   : > { %1200 = shalt.err (!%p1197_p7)
}
  0x25   : > { %s1201_s21 = scalar_lea.vmem %s1502_s15, 4096  ;;  %p1209_p1 = scmp.lt.s32.totalorder %s1502_s15, %s1502_s15 }
  0x26   : > { %p1202_p9 = scmp.ne.s32.totalorder %s1502_s15, %s1201_s21  ;;  %p1210_p4 = scmp.lt.s32.totalorder %s1201_s21, %s1201_s21 }
  0x28   : > { %p1204_p10 = pnand %p1202_p9, %p1525_p13  ;;  %p1211_p12 = por %p1210_p4, %p1209_p1 }
  0x2a   : > { %p1205_p6 = pneg %p1204_p10 }
  0x2c   : > { %p1212_p0 = pnand %p1211_p12, %p1205_p6 }
  0x2e   : > { %1215 = shalt.err (!%p1212_p0)
}
  0x2f   : > { %s1397_s22 = smov 256   ;;  %s1398_s23 = smov 16  }
  0x30   : > { %1105 = dma.hbm_to_vmem [thread:$0]  (!%p1509_p11), %s1741_s1, 4096, %s1502_s15, [#allocation7], %s1397_s22, %s1397_s22, %s1398_s23  }
  0x31   : > { %s1216_s12 = scalar_lea.hbm %s1743_s3, 4096 }
  0x32   : > { %p1217_p1 = scmp.ne.s32.totalorder %s1743_s3, %s1216_s12  ;;  %p1223_p10 = scmp.lt.u32.totalorder %s1216_s12, %s1743_s3 }
  0x34   : > { %p1219_p4 = pnand %p1217_p1, %p1525_p13 }
  0x36   : > { %p1220_p6 = pneg %p1219_p4 }
  0x38   : > { %p1225_p3 = pnand %p1223_p10, %p1220_p6 }
  0x3a   : > { %1228 = shalt.err (!%p1225_p3)
}
  0x3b   : > { %s1229_s15 = scalar_lea.vmem %s1513_s18, 4096  ;;  %p1237_p12 = scmp.lt.s32.totalorder %s1513_s18, %s1513_s18 }
  0x3c   : > { %p1230_p5 = scmp.ne.s32.totalorder %s1513_s18, %s1229_s15  ;;  %p1238_p0 = scmp.lt.s32.totalorder %s1229_s15, %s1229_s15 }
  0x3e   : > { %p1232_p7 = pnand %p1230_p5, %p1525_p13  ;;  %p1239_p1 = por %p1238_p0, %p1237_p12 }
  0x40   : > { %p1233_p9 = pneg %p1232_p7 }
  0x42   : > { %p1240_p4 = pnand %p1239_p1, %p1233_p9 }
  0x44   : > { %1243 = shalt.err (!%p1240_p4)
}
  0x45   : > { %1108 = dma.hbm_to_vmem [thread:$0]  (!%p1509_p11), %s1743_s3, 4096, %s1513_s18, [#allocation7], %s1397_s22, %s1397_s22, %s1398_s23  }
  0x46   : > { %s1244_s30 = scalar_lea.hbm %s1745_s5, 4096 }
  0x47   : > { %p1245_p6 = scmp.ne.s32.totalorder %s1745_s5, %s1244_s30  ;;  %p1251_p5 = scmp.lt.u32.totalorder %s1244_s30, %s1745_s5 }
  0x49   : > { %p1247_p10 = pnand %p1245_p6, %p1525_p13 }
  0x4b   : > { %p1248_p3 = pneg %p1247_p10 }
  0x4d   : > { %p1253_p7 = pnand %p1251_p5, %p1248_p3 }
  0x4f   : > { %1256 = shalt.err (!%p1253_p7)
}
  0x50   : > { %s1257_s15 = scalar_lea.vmem %s309_s20, 4096  ;;  %p1265_p1 = scmp.lt.s32.totalorder %s309_s20, %s309_s20 }
  0x51   : > { %p1258_p9 = scmp.ne.s32.totalorder %s309_s20, %s1257_s15  ;;  %p1266_p4 = scmp.lt.s32.totalorder %s1257_s15, %s1257_s15 }
  0x53   : > { %p1260_p12 = pnand %p1258_p9, %p1525_p13  ;;  %p1267_p8 = por %p1266_p4, %p1265_p1 }
  0x55   : > { %p1261_p0 = pneg %p1260_p12 }
  0x57   : > { %p1268_p2 = pnand %p1267_p8, %p1261_p0 }
  0x59   : > { %1271 = shalt.err (!%p1268_p2)
}
  0x5a   : > { %s1399_s18 = smov 128   ;;  %s1400_s14 = smov 8  }
  0x5b   : > { %1111 = dma.hbm_to_vmem [thread:$0]  (!%p1509_p11), %s1745_s5, 4096, %s309_s20, [#allocation10], %s1399_s18, %s1399_s18, %s1400_s14  }
  0x5c   : > { %s44_s6 = sadd.s32 1, %s1380_s26  ;;  %s37_s7 = sadd.s32 1, %s1388_s28 }
  0x5d   : > { %p51_p2 = scmp.ne.s32.totalorder %s1380_s26, %s1376_s25  ;;  %p39_p8 = scmp.ge.s32.totalorder %s37_s7, 2 }
  0x5e   : > { %p52_p13 = scmp.eq.s32.totalorder %s1392_s29, 0  ;;  %p1766_p6 = scmp.ne.s32.totalorder %s1759_s10, 0 }
  0x5f   : > { %p1123_p3 = scmp.lt.s32.totalorder %s1392_s29, 2  ;;  %s1784_s7 = smov (%p39_p8, %s37_s7), 0 }
  0x60   : > { %p1595_p10 = por %p1766_p6, %p51_p2  ;;  %p53_p5 = por %p52_p13, %p51_p2 }
  0x61   : > { %s325_s16 = sand.u32 1, %s1380_s26   ;;  %s41_s12 = ssub.s32 %s1388_s28, %s1784_s7 }
  0x62   : > { %p42_p7 = scmp.eq.s32.totalorder %s41_s12, 0  ;;  %s942_s20 = sshll.u32 %s325_s16, 3 }
  0x63   : > { %s943_s30 = sshll.u32 %s1388_s28, 7  ;;  %s329_s21 = scalar_lea.vmem [#allocation3], %s942_s20 }
  0x64   : > { %s1607_s8 = scalar_select %p42_p7, %s1380_s26, %s44_s6  }
  0x65   : > { %s1612_s10 = scalar_lea.hbm %s1740_s0, %s943_s30  ;;  %s336_s15 = sshll.u32 %s329_s21, 4  ;;  %s1614_s15 = int_to_ptr.vmem [resolvable:$true] %s336_s15 }
  0x66   : > { %p1618_p11 = pnand %p1123_p3, %p53_p5  ;;  %s326_s14 = scalar_lea.sflag [#allocation4], %s325_s16 }
  0x67   : > { %s1272_s22 = scalar_lea.hbm %s1612_s10, 128  ;;  %s1277_s12 = scalar_lea.hbm %s1740_s0, 256 }
  0x68   : > { %p1273_p9 = scmp.ne.s32.totalorder %s1612_s10, %s1272_s22  ;;  %p1274_p12 = pneg %p1618_p11 }
  0x69   : > { %p1278_p4 = scmp.lt.u32.totalorder %s1612_s10, %s1740_s0  ;;  %p1279_p2 = scmp.lt.u32.totalorder %s1277_s12, %s1272_s22 }
  0x6a   : > { %p1275_p0 = pnand %p1274_p12, %p1273_p9  ;;  %p1281_p13 = scmp.lt.u32.totalorder %s1272_s22, %s1612_s10 }
  0x6b   : > { %p1280_p8 = por %p1279_p2, %p1278_p4 }
  0x6c   : > { %p1276_p1 = pneg %p1275_p0 }
  0x6d   : > { %p1282_p6 = por %p1281_p13, %p1280_p8 }
  0x6f   : > { %p1283_p3 = pnand %p1282_p6, %p1276_p1 }
  0x71   : > { %1286 = shalt.err (!%p1283_p3)
}
  0x72   : > { %s1287_s16 = scalar_lea.vmem %s1614_s15, 128  ;;  %s1401_s17 = smov [#allocation3]  }
  0x73   : > { %p1288_p5 = scmp.ne.s32.totalorder %s1614_s15, %s1287_s16  ;;  %s1292_s19 = sshll.u32 %s1401_s17, 4  ;;  %s1293_s19 = int_to_ptr.vmem [resolvable:$false] %s1292_s19 }
  0x74   : > { %s1294_s21 = scalar_lea.vmem %s1293_s19, 256  ;;  %p1295_p0 = scmp.lt.s32.totalorder %s1614_s15, %s1293_s19 }
  0x75   : > { %p1290_p7 = pnand %p1288_p5, %p1274_p12  ;;  %p1296_p4 = scmp.lt.s32.totalorder %s1294_s21, %s1287_s16 }
  0x77   : > { %p1291_p9 = pneg %p1290_p7  ;;  %p1297_p2 = por %p1296_p4, %p1295_p0 }
  0x79   : > { %p1298_p8 = pnand %p1297_p2, %p1291_p9 }
  0x7b   : > { %1301 = shalt.err (!%p1298_p8)
}
  0x7c   : > { %1115 = dma.hbm_to_vmem [thread:$0]  (!%p1618_p11), %s1612_s10, 128, %s1614_s15, %s326_s14  }
  0x7d   : > { %p1769_p1 = scmp.ne.s32.totalorder %s1763_s13, 0 }
  0x7e   : > { %s1650_s22 = sand.u32 (!%p1769_p1), 1, %s1376_s25   ;;  %p1770_p12 = scmp.ne.s32.totalorder (!%p1769_p1), %s1760_s11, 0 }
  0x7f   : > { %345 = sbr.rel (%p1769_p1) target bundleno = 643 (0x283), region = 48  ;;  %s945_s23 = sshll.u32 (!%p1769_p1), %s1650_s22, 3 }
  0x80   : > { %s348_s6 = scalar_lea.sflag (!%p1769_p1), [#allocation4], %s1650_s22  ;;  %s1656_s12 = scalar_lea.vmem (!%p1769_p1), [#allocation3], %s945_s23 }
  0x86   : > { %1355 = dma.done.wait (%p1770_p12), %s348_s6, 128  }
  0x87   : > { %1357 = vsyncadd (%p1770_p12), %s348_s6, 4294967168  ;;  %p1771_p11 = scmp.ne.s32.totalorder %s1758_s9, 0 }
  0x89   : > { %1359 = dma.done.wait (%p1771_p11), [#allocation7], 8192  }
  0x8a   : > { %1361 = vsyncadd (%p1771_p11), [#allocation7], 4294959104 }
  0x8b   : > { %1363 = dma.done.wait (%p1771_p11), [#allocation10], 4096  }
  0x8c   : > { %1365 = vsyncadd (%p1771_p11), [#allocation10], 4294963200  ;;  %v1402_v0 = vmov 0.0   ;;  %v537_v1 = vld [vmem:[#allocation8 + $0x8] sm:$0xff]  ;;  %v539_v2 = vld [vmem:[#allocation8 + $0x18] sm:$0xff]  ;;  %s1772_s14 = sld [smem:[#allocation18_spill]] }
  0x8d   : > { %644 = vmatprep.mubr.f32.mxu1 %v1402_v0  ;;  %529 = vmatprep.mubr.f32.mxu0 %v1402_v0  ;;  %v536_v3 = vld [vmem:[#allocation8] sm:$0xff]  ;;  %v1022_v4 = vpack.c.bf16 %v539_v2, %v537_v1  ;;  %v538_v5 = vld [vmem:[#allocation8 + $0x10] sm:$0xff]  ;;  %v541_v6 = vld [vmem:[#allocation8 + $0x28] sm:$0xff]  ;;  %s952_s20 = sshll.u32 %s1384_s27, 7  ;;  %s401_s30 = scalar_lea.vmem [#allocation11], %s945_s23 }
  0x8e   : > { %v543_v7 = vld [vmem:[#allocation8 + $0x38] sm:$0xff]  ;;  %v1024_v8 = vpack.c.bf16 %v538_v5, %v536_v3  ;;  %v540_v10 = vld [vmem:[#allocation8 + $0x20] sm:$0xff]  ;;  %v542_v11 = vld [vmem:[#allocation8 + $0x30] sm:$0xff]  ;;  %s796_s16 = sshll.u32 %s401_s30, 4  ;;  %s1773_s21 = sld [smem:[#allocation19_spill]]  ;;  %s1693_s16 = int_to_ptr.vmem [resolvable:$true] %s796_s16 }
  0x8f   : > { %v1026_v9 = vpack.c.bf16 %v543_v7, %v541_v6  ;;  %v545_v12 = vld [vmem:[#allocation8 + $0x48] sm:$0xff]  ;;  %1023 = vmatprep.subr.bf16.mxu1 %v1022_v4  ;;  %v547_v13 = vld [vmem:[#allocation8 + $0x58] sm:$0xff]  ;;  %v1028_v14 = vpack.c.bf16 %v542_v11, %v540_v10  ;;  %v544_v15 = vld [vmem:[#allocation8 + $0x40] sm:$0xff]  ;;  %s1302_s9 = scalar_lea.vmem %s1693_s16, 128  ;;  %s1403_s27 = smov [#allocation11]  }
  0x90   : > { %1025 = vmatpush1.bf16.msra.mxu1 %v1024_v8  ;;  %v1030_v16 = vpack.c.bf16 %v547_v13, %v545_v12  ;;  %v546_v17 = vld [vmem:[#allocation8 + $0x50] sm:$0xff]  ;;  %v422_v18 = vld [vmem:[#allocation6 + $0x8] sm:$0xff]  ;;  %v424_v19 = vld [vmem:[#allocation6 + $0x18] sm:$0xff]  ;;  %p1303_p13 = scmp.ne.s32.totalorder %s1693_s16, %s1302_s9  ;;  %s1306_s23 = sshll.u32 %s1403_s27, 4  ;;  %s1307_s23 = int_to_ptr.vmem [resolvable:$false] %s1306_s23 }
  0x91   : > { %1027 = vmatprep.subr.bf16.mxu1 %v1026_v9  ;;  %v549_v20 = vld [vmem:[#allocation8 + $0x68] sm:$0xff]  ;;  %v551_v21 = vld [vmem:[#allocation8 + $0x78] sm:$0xff]  ;;  %v990_v22 = vpack.c.bf16 %v424_v19, %v422_v18  ;;  %v421_v23 = vld [vmem:[#allocation6] sm:$0xff]  ;;  %v1032_v25 = vpack.c.bf16 %v546_v17, %v544_v15  ;;  %s1308_s11 = scalar_lea.vmem %s1307_s23, 256  ;;  %p1309_p5 = scmp.lt.s32.totalorder %s1693_s16, %s1307_s23 }
  0x92   : > { %v423_v24 = vld [vmem:[#allocation6 + $0x10] sm:$0xff]  ;;  %v548_v26 = vld [vmem:[#allocation8 + $0x60] sm:$0xff]  ;;  %v426_v28 = vld [vmem:[#allocation6 + $0x28] sm:$0xff]  ;;  %v1034_v30 = vpack.c.bf16 %v551_v21, %v549_v20  ;;  %p1304_p6 = pnand %p1303_p13, %p1595_p10  ;;  %p1310_p7 = scmp.lt.s32.totalorder %s1308_s11, %s1302_s9 }
  0x93   : > { %991 = vmatprep.subr.bf16.mxu0 %v990_v22  ;;  %v992_v27 = vpack.c.bf16 %v423_v24, %v421_v23  ;;  %v428_v29 = vld [vmem:[#allocation6 + $0x38] sm:$0xff]  ;;  %v550_v31 = vld [vmem:[#allocation8 + $0x70] sm:$0xff]  ;;  %v425_v33 = vld [vmem:[#allocation6 + $0x20] sm:$0xff] }
  0x94   : > { %1029 = vmatpush1.bf16.msra.mxu1 %v1028_v14  ;;  %v994_v32 = vpack.c.bf16 %v428_v29, %v426_v28  ;;  %v427_v34 = vld [vmem:[#allocation6 + $0x30] sm:$0xff]  ;;  %v553_v35 = vld [vmem:[#allocation8 + $0x88] sm:$0xff]  ;;  %v555_v36 = vld [vmem:[#allocation8 + $0x98] sm:$0xff]  ;;  %v1036_v40 = vpack.c.bf16 %v550_v31, %v548_v26  ;;  %s1691_s6 = scalar_lea.hbm %s1773_s21, %s952_s20  ;;  %p1305_p3 = pneg %p1304_p6 }
  0x95   : > { %1031 = vmatprep.subr.bf16.mxu1 %v1030_v16  ;;  %993 = vmatpush1.bf16.msra.mxu0 %v992_v27  ;;  %v996_v37 = vpack.c.bf16 %v427_v34, %v425_v33  ;;  %v430_v38 = vld [vmem:[#allocation6 + $0x48] sm:$0xff]  ;;  %v432_v39 = vld [vmem:[#allocation6 + $0x58] sm:$0xff]  ;;  %v552_v41 = vld [vmem:[#allocation8 + $0x80] sm:$0xff]  ;;  %v1038_v45 = vpack.c.bf16 %v555_v36, %v553_v35  ;;  %p1311_p9 = por %p1310_p7, %p1309_p5 }
  0x96   : > { %995 = vmatprep.subr.bf16.mxu0 %v994_v32  ;;  %v998_v42 = vpack.c.bf16 %v432_v39, %v430_v38  ;;  %v429_v43 = vld [vmem:[#allocation6 + $0x40] sm:$0xff]  ;;  %v431_v44 = vld [vmem:[#allocation6 + $0x50] sm:$0xff]  ;;  %v434_v47 = vld [vmem:[#allocation6 + $0x68] sm:$0xff] }
  0x97   : > { %v554_v46 = vld [vmem:[#allocation8 + $0x90] sm:$0xff]  ;;  %v436_v48 = vld [vmem:[#allocation6 + $0x78] sm:$0xff]  ;;  %v557_v49 = vld [vmem:[#allocation8 + $0xa8] sm:$0xff]  ;;  %v1000_v51 = vpack.c.bf16 %v431_v44, %v429_v43  ;;  %p1312_p0 = pnand %p1311_p9, %p1305_p3 }
  0x98   : > { %1033 = vmatpush1.bf16.msra.mxu1 %v1032_v25  ;;  %v559_v50 = vld [vmem:[#allocation8 + $0xb8] sm:$0xff]  ;;  %v1002_v52 = vpack.c.bf16 %v436_v48, %v434_v47  ;;  %v433_v53 = vld [vmem:[#allocation6 + $0x60] sm:$0xff]  ;;  %v435_v54 = vld [vmem:[#allocation6 + $0x70] sm:$0xff]  ;;  %v1040_v55 = vpack.c.bf16 %v554_v46, %v552_v41 }
  0x99   : > { %1035 = vmatprep.subr.bf16.mxu1 %v1034_v30  ;;  %997 = vmatpush1.bf16.msra.mxu0 %v996_v37  ;;  %v438_v56 = vld [vmem:[#allocation6 + $0x88] sm:$0xff]  ;;  %v440_v57 = vld [vmem:[#allocation6 + $0x98] sm:$0xff]  ;;  %v1042_v58 = vpack.c.bf16 %v559_v50, %v557_v49  ;;  %v556_v59 = vld [vmem:[#allocation8 + $0xa0] sm:$0xff]  ;;  %v1004_v63 = vpack.c.bf16 %v435_v54, %v433_v53 }
  0x9a   : > { %999 = vmatprep.subr.bf16.mxu0 %v998_v42  ;;  %v558_v60 = vld [vmem:[#allocation8 + $0xb0] sm:$0xff]  ;;  %v561_v61 = vld [vmem:[#allocation8 + $0xc8] sm:$0xff]  ;;  %v563_v62 = vld [vmem:[#allocation8 + $0xd8] sm:$0xff]  ;;  %v1006_v0 = vpack.c.bf16 %v440_v57, %v438_v56 }
  0x9b   : > { %v437_v1 = vld [vmem:[#allocation6 + $0x80] sm:$0xff]  ;;  %v439_v2 = vld [vmem:[#allocation6 + $0x90] sm:$0xff]  ;;  %v1044_v3 = vpack.c.bf16 %v558_v60, %v556_v59  ;;  %v442_v4 = vld [vmem:[#allocation6 + $0xa8] sm:$0xff]  ;;  %v1046_v6 = vpack.c.bf16 %v563_v62, %v561_v61 }
  0x9c   : > { %1037 = vmatpush1.bf16.msra.mxu1 %v1036_v40  ;;  %v444_v5 = vld [vmem:[#allocation6 + $0xb8] sm:$0xff]  ;;  %v560_v7 = vld [vmem:[#allocation8 + $0xc0] sm:$0xff]  ;;  %v562_v8 = vld [vmem:[#allocation8 + $0xd0] sm:$0xff]  ;;  %v1008_v11 = vpack.c.bf16 %v439_v2, %v437_v1 }
  0x9d   : > { %1039 = vmatprep.subr.bf16.mxu1 %v1038_v45  ;;  %1001 = vmatpush1.bf16.msra.mxu0 %v1000_v51  ;;  %v565_v9 = vld [vmem:[#allocation8 + $0xe8] sm:$0xff]  ;;  %v567_v10 = vld [vmem:[#allocation8 + $0xf8] sm:$0xff]  ;;  %v1010_v12 = vpack.c.bf16 %v444_v5, %v442_v4  ;;  %v441_v13 = vld [vmem:[#allocation6 + $0xa0] sm:$0xff]  ;;  %v1048_v15 = vpack.c.bf16 %v562_v8, %v560_v7 }
  0x9e   : > { %1003 = vmatprep.subr.bf16.mxu0 %v1002_v52  ;;  %v443_v14 = vld [vmem:[#allocation6 + $0xb0] sm:$0xff]  ;;  %v446_v16 = vld [vmem:[#allocation6 + $0xc8] sm:$0xff]  ;;  %v448_v17 = vld [vmem:[#allocation6 + $0xd8] sm:$0xff]  ;;  %v1050_v18 = vpack.c.bf16 %v567_v10, %v565_v9 }
  0x9f   : > { %v564_v19 = vld [vmem:[#allocation8 + $0xe0] sm:$0xff]  ;;  %v566_v20 = vld [vmem:[#allocation8 + $0xf0] sm:$0xff]  ;;  %v1012_v21 = vpack.c.bf16 %v443_v14, %v441_v13  ;;  %v1014_v22 = vpack.c.bf16 %v448_v17, %v446_v16  ;;  %v450_v26 = vld [vmem:[#allocation6 + $0xe8] sm:$0xff] }
  0xa0   : > { %1041 = vmatpush1.bf16.msra.mxu1 %v1040_v55  ;;  %v445_v23 = vld [vmem:[#allocation6 + $0xc0] sm:$0xff]  ;;  %v447_v24 = vld [vmem:[#allocation6 + $0xd0] sm:$0xff]  ;;  %v1052_v25 = vpack.c.bf16 %v566_v20, %v564_v19  ;;  %v452_v27 = vld [vmem:[#allocation6 + $0xf8] sm:$0xff] }
  0xa1   : > { %1043 = vmatprep.subr.bf16.mxu1 %v1042_v58  ;;  %1005 = vmatpush1.bf16.msra.mxu0 %v1004_v63  ;;  %v1016_v28 = vpack.c.bf16 %v447_v24, %v445_v23  ;;  %v1018_v29 = vpack.c.bf16 %v452_v27, %v450_v26  ;;  %v449_v30 = vld [vmem:[#allocation6 + $0xe0] sm:$0xff]  ;;  %v451_v31 = vld [vmem:[#allocation6 + $0xf0] sm:$0xff]  ;;  %v681_v34 = vld [vmem:[#allocation9 + $0x88] sm:$0xff] }
  0xa2   : > { %1007 = vmatprep.subr.bf16.mxu0 %v1006_v0  ;;  %v1671_v32 = vld [vmem:[%s1656_s12] sm:$0xff]  ;;  %v680_v33 = vld [vmem:[#allocation9 + $0x80] sm:$0xff]  ;;  %v1020_v35 = vpack.c.bf16 %v451_v31, %v449_v30  ;;  %v665_v38 = vld [vmem:[#allocation9 + $0x8] sm:$0xff]  ;;  %s783_s12 = scalar_lea.sflag [#allocation5], %s1650_s22 }
  0xa3   : > { %v1054_v36 = vpack.c.bf16 %v681_v34, %v680_v33  ;;  %v664_v37 = vld [vmem:[#allocation9] sm:$0xff]  ;;  %v682_v39 = vld [vmem:[#allocation9 + $0x90] sm:$0xff]  ;;  %v683_v40 = vld [vmem:[#allocation9 + $0x98] sm:$0xff] }
  0xa4   : > { %1045 = vmatpush1.bf16.msra.mxu1 %v1044_v3  ;;  %v1056_v41 = vpack.c.bf16 %v665_v38, %v664_v37  ;;  %v1058_v42 = vpack.c.bf16 %v683_v40, %v682_v39  ;;  %v666_v43 = vld [vmem:[#allocation9 + $0x10] sm:$0xff]  ;;  %v667_v44 = vld [vmem:[#allocation9 + $0x18] sm:$0xff]  ;;  %v684_v46 = vld [vmem:[#allocation9 + $0xa0] sm:$0xff] }
  0xa5   : > { %1047 = vmatprep.subr.bf16.mxu1 %v1046_v6  ;;  %1009 = vmatpush1.bf16.msra.mxu0 %v1008_v11  ;;  %v1060_v45 = vpack.c.bf16 %v667_v44, %v666_v43  ;;  %v685_v47 = vld [vmem:[#allocation9 + $0xa8] sm:$0xff]  ;;  %v668_v49 = vld [vmem:[#allocation9 + $0x20] sm:$0xff]  ;;  %v686_v52 = vld [vmem:[#allocation9 + $0xb0] sm:$0xff] }
  0xa6   : > { %1011 = vmatprep.subr.bf16.mxu0 %v1010_v12  ;;  %v1062_v48 = vpack.c.bf16 %v685_v47, %v684_v46  ;;  %v669_v50 = vld [vmem:[#allocation9 + $0x28] sm:$0xff]  ;;  %v687_v53 = vld [vmem:[#allocation9 + $0xb8] sm:$0xff]  ;;  %v670_v55 = vld [vmem:[#allocation9 + $0x30] sm:$0xff] }
  0xa7   : > { %v1064_v51 = vpack.c.bf16 %v669_v50, %v668_v49  ;;  %v1066_v54 = vpack.c.bf16 %v687_v53, %v686_v52  ;;  %v671_v56 = vld [vmem:[#allocation9 + $0x38] sm:$0xff]  ;;  %v688_v58 = vld [vmem:[#allocation9 + $0xc0] sm:$0xff]  ;;  %v689_v59 = vld [vmem:[#allocation9 + $0xc8] sm:$0xff] }
  0xa8   : > { %1049 = vmatpush1.bf16.msra.mxu1 %v1048_v15  ;;  %v1068_v57 = vpack.c.bf16 %v671_v56, %v670_v55  ;;  %v1070_v60 = vpack.c.bf16 %v689_v59, %v688_v58  ;;  %v672_v61 = vld [vmem:[#allocation9 + $0x40] sm:$0xff]  ;;  %v673_v62 = vld [vmem:[#allocation9 + $0x48] sm:$0xff]  ;;  %v690_v0 = vld [vmem:[#allocation9 + $0xd0] sm:$0xff] }
  0xa9   : > { %1051 = vmatprep.subr.bf16.mxu1 %v1050_v18  ;;  %1013 = vmatpush1.bf16.msra.mxu0 %v1012_v21  ;;  %v1072_v63 = vpack.c.bf16 %v673_v62, %v672_v61  ;;  %v691_v1 = vld [vmem:[#allocation9 + $0xd8] sm:$0xff]  ;;  %v674_v3 = vld [vmem:[#allocation9 + $0x50] sm:$0xff]  ;;  %v692_v6 = vld [vmem:[#allocation9 + $0xe0] sm:$0xff]  ;;  %v455_v18 = vlaneseq }
  0xaa   : > { %1015 = vmatprep.subr.bf16.mxu0 %v1014_v22  ;;  %v1074_v2 = vpack.c.bf16 %v691_v1, %v690_v0  ;;  %v675_v4 = vld [vmem:[#allocation9 + $0x58] sm:$0xff]  ;;  %v693_v7 = vld [vmem:[#allocation9 + $0xe8] sm:$0xff]  ;;  %v676_v9 = vld [vmem:[#allocation9 + $0x60] sm:$0xff] }
  0xab   : > { %v1076_v5 = vpack.c.bf16 %v675_v4, %v674_v3  ;;  %v1078_v8 = vpack.c.bf16 %v693_v7, %v692_v6  ;;  %v677_v10 = vld [vmem:[#allocation9 + $0x68] sm:$0xff]  ;;  %v694_v12 = vld [vmem:[#allocation9 + $0xf0] sm:$0xff]  ;;  %v695_v13 = vld [vmem:[#allocation9 + $0xf8] sm:$0xff]  ;;  %v456_v19 = vshrl.u32 %v455_v18, 7 }
  0xac   : > { %1053 = vmatpush1.bf16.msra.mxu1 %v1052_v25  ;;  %v1080_v11 = vpack.c.bf16 %v677_v10, %v676_v9  ;;  %v1082_v14 = vpack.c.bf16 %v695_v13, %v694_v12  ;;  %v678_v15 = vld [vmem:[#allocation9 + $0x70] sm:$0xff]  ;;  %v679_v16 = vld [vmem:[#allocation9 + $0x78] sm:$0xff] }
  0xad   : > { %1017 = vmatpush1.bf16.msra.mxu0 %v1016_v28  ;;  %v1084_v17 = vpack.c.bf16 %v679_v16, %v678_v15  ;;  %v457_v20 = vsub.s32 0, %v456_v19  ;;  %v568_v21 = vld [vmem:[%s1744_s4] sm:$0x3]  ;;  %v461_v22 = vsub.s32 1, %v456_v19 }
  0xae   : > { %1019 = vmatprep.subr.bf16.mxu0 %v1018_v29  ;;  %v453_v34 = vld [vmem:[%s1742_s2] sm:$0x3] }
  0xaf   : > { %645 = vmatmul.mubr.f32.vlgmr.msra.gmra.mrb[0].mxu1 %v1671_v32  ;;  %v573_v23 = vrot.slane %v568_v21, %v457_v20  ;;  %v577_v24 = vrot.slane %v568_v21, %v461_v22 }
  0xb1   : > { %1021 = vmatpush1.bf16.msra.mxu0 %v1020_v35  ;;  %v458_v35 = vrot.slane %v453_v34, %v457_v20 }
  0xb2   : > { %1055 = vmatprep.subr.bf16.mxu0 %v1054_v36  ;;  %v462_v36 = vrot.slane %v453_v34, %v461_v22 }
  0xb4   : > { %530 = vmatmul.mubr.f32.vlgmr.msra.gmra.mrb[0].mxu0 %v1671_v32 }
  0xb5   : > { %1057 = vmatpush3.bf16.msra.mxu0 %v1056_v41 }
  0xb6   : > { %1059 = vmatprep.subr.bf16.mxu0 %v1058_v42 }
  0xb9   : > { %1061 = vmatpush3.bf16.msra.mxu0 %v1060_v45 }
  0xba   : > { %1063 = vmatprep.subr.bf16.mxu0 %v1062_v48 }
  0xbd   : > { %1065 = vmatpush3.bf16.msra.mxu0 %v1064_v51  ;;  %v950_v51 = vld [vmem:[%s1772_s14] ss:$0 sm:$0xff] }
  0xbe   : > { %1067 = vmatprep.subr.bf16.mxu0 %v1066_v54 }
  0xc1   : > { %1069 = vmatpush3.bf16.msra.mxu0 %v1068_v57 }
  0xc2   : > { %1071 = vmatprep.subr.bf16.mxu0 %v1070_v60 }
  0xc5   : > { %1073 = vmatpush3.bf16.msra.mxu0 %v1072_v63 }
  0xc6   : > { %1075 = vmatprep.subr.bf16.mxu0 %v1074_v2 }
  0xc9   : > { %1077 = vmatpush3.bf16.msra.mxu0 %v1076_v5 }
  0xca   : > { %1079 = vmatprep.subr.bf16.mxu0 %v1078_v8 }
  0xcd   : > { %1081 = vmatpush3.bf16.msra.mxu0 %v1080_v11 }
  0xce   : > { %1083 = vmatprep.subr.bf16.mxu0 %v1082_v14 }
  0xd1   : > { %1085 = vmatpush3.bf16.msra.mxu0 %v1084_v17 }
 0x182   : > { %v646_v25 = vpop.f32.mrb[0].mxu1 }
 0x183   : > { %v647_v26 = vadd.f32 %v646_v25, %v573_v23  ;;  %v648_v27 = vpop.f32.mrb[1].mxu1 }
 0x184   : > { %v649_v28 = vadd.f32 %v648_v27, %v577_v24 }
 0x185   : > { %v653_v29 = vmul.f32 0.70710677, %v647_v26  ;;  %v651_v39 = vmul.f32 0.5, %v647_v26 }
 0x186   : > { %v654_v30 = vmul.f32 0.70710677, %v649_v28  ;;  %v652_v42 = vmul.f32 0.5, %v649_v28 }
 0x187   : > { %1184 = verf.f32 %v653_v29  ;;  %v531_v31 = vpop.f32.mrb[0].mxu0 }
 0x188   : > { %1186 = verf.f32 %v654_v30  ;;  %v533_v33 = vpop.f32.mrb[1].mxu0  ;;  %v532_v41 = vadd.f32 %v531_v31, %v458_v35 }
 0x189   : > { %v534_v44 = vadd.f32 %v533_v33, %v462_v36 }
 0x191   : > { %v1185_v37 = vpop.eup %1184 }
 0x192   : > { %v1187_v38 = vpop.eup %1186  ;;  %v657_v40 = vadd.f32 1.0, %v1185_v37 }
 0x193   : > { %v658_v43 = vadd.f32 1.0, %v1187_v38 }
 0x194   : > { %v659_v45 = vmul.f32 %v657_v40, %v651_v39 }
 0x195   : > { %v660_v46 = vmul.f32 %v658_v43, %v652_v42 }
 0x196   : > { %v661_v47 = vmul.f32 %v659_v45, %v532_v41 }
 0x197   : > { %v662_v48 = vmul.f32 %v660_v46, %v534_v44 }
 0x199   : > { %760 = vmatprep.mubr.f32.mxu0 %v662_v48 }
 0x19a   : > { %761 = vmatmul.mubr.f32.vlgmr.msra.gmra.mrb[2].mxu0 %v661_v47 }
 0x26d   : > { %v987_v49 = vpop.f32.mrb[2].mxu0 }
 0x26e   : > { %v988_v50 = vpop.f32.mrb[3].mxu0 }
 0x26f   : > { %v989_v52 = vadd.f32 %v988_v50, %v987_v49 }
 0x271   : > { %v779_v53 = vadd.f32 %v989_v52, %v950_v51 }
 0x273   : > { %v780_v54 = vadd.f32 %v779_v53, %v1671_v32 }
 0x275   : > { %781 = vst [vmem:[%s401_s30] sm:$0xff] %v780_v54 }
 0x276   : > { %1315 = shalt.err (!%p1312_p0)
}
 0x277   : > { %s1316_s22 = scalar_lea.hbm %s1691_s6, 128  ;;  %s1320_s15 = scalar_lea.hbm %s1773_s21, 256 }
 0x278   : > { %p1317_p4 = scmp.ne.s32.totalorder %s1691_s6, %s1316_s22  ;;  %p1321_p1 = scmp.lt.u32.totalorder %s1691_s6, %s1773_s21 }
 0x279   : > { %p1322_p12 = scmp.lt.u32.totalorder %s1320_s15, %s1316_s22  ;;  %p1324_p13 = scmp.lt.u32.totalorder %s1316_s22, %s1691_s6 }
 0x27a   : > { %p1318_p2 = pnand %p1317_p4, %p1595_p10 }
 0x27b   : > { %p1323_p11 = por %p1322_p12, %p1321_p1 }
 0x27c   : > { %p1319_p8 = pneg %p1318_p2 }
 0x27d   : > { %p1325_p6 = por %p1324_p13, %p1323_p11 }
 0x27f   : > { %p1326_p3 = pnand %p1325_p6, %p1319_p8 }
 0x281   : > { %1329 = shalt.err (!%p1326_p3)
}
 0x282   : > { %1100 = dma.vmem_to_hbm [thread:$0]  (%p1595_p10), %s1693_s16, 128, %s1691_s6, %s783_s12  }
 0x283 PF: > { %s1774_s20 = sld [smem:[#allocation16_spill]]  ;;  %s1775_s30 = sld [smem:[#allocation17_spill]] }
 0x284   : > { %p1777_p7 = scmp.ge.s32.totalorder %s1392_s29, 2 }
 0x289   : > { %s808_s17 = sand.u32 1, %s1774_s20   ;;  %p1776_p5 = scmp.ne.s32.totalorder %s1775_s30, 0 }
 0x28a   : > { %s809_s19 = scalar_lea.sflag [#allocation5], %s808_s17 }
 0x28b   : > { %p1117_p9 = pnand %p1777_p7, %p1776_p5 }
 0x28d   : > { %1367 = dma.done.wait (!%p1117_p9), %s809_s19, 128  }
 0x28e   : > { %1369 = vsyncadd (!%p1117_p9), %s809_s19, 4294967168  ;;  %s25_s29 = sadd.s32 1, %s1392_s29   ;;  %s1778_s24 = smov %s1376_s25 }
 0x28f   : > { %p22_p0 = scmp.ge.s32.totalorder %s25_s29, 4   ;;  %s1779_s25 = smov %s1380_s26 }
 0x290   : > { %s1780_s26 = smov %s1607_s8  ;;  %s1781_s27 = smov %s1388_s28 }
 0x291   : > { %s1782_s28 = smov %s1784_s7  ;;  %24 = sbr.rel (!%p22_p0) target bundleno = 11 (0xb), region = 122 }
 0x298   :  { %814 = vsyncpa [#allocation4], 1 }
 0x299   :  { %816 = vsyncpa [#allocation4 + $0x1], 1 }
 0x29a   :  { %817 = vsyncpa [#allocation7], 1 }
 0x29b   :  { %818 = vsyncpa [#allocation10], 1 }
 0x29c   :  { %819 = vsyncpa [#allocation5], 1 }
 0x29d   :  { %821 = vsyncpa [#allocation5 + $0x1], 1 }

</bundles_post_ra>
